<compile_context>
chip_gen: v5e
topology: v5e:2x2
jax: 0.10.0
libtpu: 0.0.40
codegen_flags: <defaults>
</compile_context>

<pallas_src>
import math

import jax
import jax.numpy as jnp
from jax.experimental import pallas as pl
from jax.experimental.pallas import tpu as pltpu

_INV_SQRT2 = 1.0 / math.sqrt(2.0)


# ---------------------------------------------------------------------------
# Kernels
# ---------------------------------------------------------------------------
def _gelu_exact_f32(h):
    # Exact (erf-based) GELU, matching torch.nn.GELU() default, f32 math.
    return 0.5 * h * (1.0 + jax.lax.erf(h * _INV_SQRT2))


def _mlp_kernel_resident(x_ref, w1_ref, b1_ref, w2_ref, b2_ref, o_ref):
    # grid = (M tiles,)  -- weights stay VMEM-resident (constant index_maps).
    h = jnp.dot(x_ref[...], w1_ref[...], preferred_element_type=jnp.float32)
    h = _gelu_exact_f32(h + b1_ref[...].astype(jnp.float32))
    out = jnp.dot(h.astype(w2_ref.dtype), w2_ref[...],
                  preferred_element_type=jnp.float32)
    out = out + b2_ref[...].astype(jnp.float32)
    o_ref[...] = out.astype(o_ref.dtype)


def _mlp_kernel_streamed(x_ref, w1_ref, b1_ref, w2_ref, b2_ref, o_ref, acc_ref):
    # grid = (M tiles [parallel], hidden-dim tiles [arbitrary, reduction])
    j = pl.program_id(1)

    @pl.when(j == 0)
    def _init():
        # Seed the accumulator with b2 so the epilogue add disappears.
        acc_ref[...] = jnp.broadcast_to(
            b2_ref[...].astype(jnp.float32), acc_ref.shape)

    h = jnp.dot(x_ref[...], w1_ref[...], preferred_element_type=jnp.float32)
    h = _gelu_exact_f32(h + b1_ref[...].astype(jnp.float32))
    acc_ref[...] += jnp.dot(h.astype(w2_ref.dtype), w2_ref[...],
                            preferred_element_type=jnp.float32)

    @pl.when(j == pl.num_programs(1) - 1)
    def _finalize():
        o_ref[...] = acc_ref[...].astype(o_ref.dtype)


# ---------------------------------------------------------------------------
# Tiling helpers
# ---------------------------------------------------------------------------
def _round_up(x, m):
    return ((x + m - 1) // m) * m


def _sublane_multiple(itemsize):
    # Sub-32-bit dtypes pack along sublanes: 8 rows (f32), 16 (bf16), 32 (i8).
    return {4: 8, 2: 16, 1: 32}.get(int(itemsize), 8)


def _pick_tk(d_ff):
    """Hidden-dim block size: 256-multiple preferred (2x256 MXU), else full."""
    if d_ff <= 512:
        return d_ff
    for cand in (512, 256, 128):   # 384 dropped (half-utilized 256-wide MXU)
        if d_ff % cand == 0:
            return cand
    return d_ff


def _vmem_capacity_bytes():
    try:
        return int(pltpu.get_tpu_info().vmem_capacity_bytes)
    except Exception:
        return 64 * 1024 * 1024   # v7x per-TC physical VMEM (most restrictive)


def _footprint_resident(tm, d_model, d_ff, d_out_p, it, wt):
    tiles = tm * d_model * it + tm * d_out_p * it            # x, out (pipelined)
    weights = (d_model * d_ff + d_ff + d_ff * d_out_p + d_out_p) * wt
    temps = tm * d_ff * 4 + tm * d_out_p * 4                 # f32 hidden / out
    return 2 * tiles + 2 * weights + 2 * temps


def _footprint_streamed(tm, tk, d_model, d_out_p, it, wt):
    tiles = (tm * d_model * it + d_model * tk * wt + tk * wt
             + tk * d_out_p * wt + d_out_p * wt + tm * d_out_p * it)
    scratch = tm * d_out_p * 4                                # f32 accumulator
    temps = 2 * tm * tk * 4                                   # f32 hidden tile
    return 2 * tiles + scratch + temps


# ---------------------------------------------------------------------------
# Wrapper
# ---------------------------------------------------------------------------
@jax.jit
def mlp_forward(x, w1, b1, w2, b2):
    """x: [..., d_model] -> [..., d_out]; matches PyTorch MLP.forward.

    Weights stored transposed vs PyTorch: (in, out) so y = x @ W + b.
    """
    *lead, d_model = x.shape
    d_ff = w1.shape[1]
    d_out = w2.shape[1]
    b1 = b1.reshape(1, d_ff)
    b2 = b2.reshape(1, d_out)

    m = 1
    for s in lead:
        m *= s
    x2d = x.reshape(m, d_model)

    it = x.dtype.itemsize
    wt = w1.dtype.itemsize
    sub = _sublane_multiple(it)

    vmem_phys = _vmem_capacity_bytes()
    budget = int(0.70 * vmem_phys)

    # --- M tile -----------------------------------------------------------
    tm = min(512, _round_up(m, sub))
    # v7x megacore: make sure the "parallel" axis has >= 2 tiles when m allows.
    if _round_up(m, tm) // tm == 1 and m > sub:
        tm = max(_round_up(pl.cdiv(m, 2), sub), sub)

    d_out_p = _round_up(d_out, 128)          # lane-dense output stores

    # --- Mode / hidden tile selection --------------------------------------
    resident = _footprint_resident(tm, d_model, d_ff, d_out_p, it, wt) <= budget
    if resident:
        tk = d_ff
        footprint = _footprint_resident(tm, d_model, d_ff, d_out_p, it, wt)
    else:
        tk = _pick_tk(d_ff)
        while tm > sub and _footprint_streamed(tm, tk, d_model, d_out_p, it, wt) > budget:
            tm = max(_round_up(tm // 2, sub), sub)
        footprint = _footprint_streamed(tm, tk, d_model, d_out_p, it, wt)

    m_pad = _round_up(m, tm)
    n_m = m_pad // tm

    vmem_limit = min(int(0.9 * vmem_phys), max(int(footprint * 1.3), 16 << 20))

    # --- Wrapper-side padding (zeros; sliced off afterwards) ---------------
    if m_pad != m:
        x2d = jnp.pad(x2d, ((0, m_pad - m), (0, 0)))
    w2_p = jnp.pad(w2, ((0, 0), (0, d_out_p - d_out))) if d_out_p != d_out else w2
    b2_p = jnp.pad(b2, ((0, 0), (0, d_out_p - d_out))) if d_out_p != d_out else b2

    # --- Cost estimate (real traffic under the chosen scheme) --------------
    weight_bytes = (w1.size * w1.dtype.itemsize + b1.size * b1.dtype.itemsize
                    + w2_p.size * w2_p.dtype.itemsize + b2_p.size * b2_p.dtype.itemsize)
    weight_passes = 1 if resident else n_m
    cost = pl.CostEstimate(
        flops=2 * m_pad * d_model * d_ff + 2 * m_pad * d_ff * d_out_p,
        transcendentals=m_pad * d_ff,
        bytes_accessed=(x2d.size * x2d.dtype.itemsize
                        + weight_passes * weight_bytes
                        + m_pad * d_out_p * x.dtype.itemsize),
    )

    if resident:
        out2d = pl.pallas_call(
            _mlp_kernel_resident,
            out_shape=jax.ShapeDtypeStruct((m_pad, d_out_p), x.dtype),
            grid=(n_m,),
            in_specs=[
                pl.BlockSpec((tm, d_model), lambda i: (i, 0)),     # x tile
                pl.BlockSpec((d_model, d_ff), lambda i: (0, 0)),   # w1 resident
                pl.BlockSpec((1, d_ff), lambda i: (0, 0)),         # b1 resident
                pl.BlockSpec((d_ff, d_out_p), lambda i: (0, 0)),   # w2 resident
                pl.BlockSpec((1, d_out_p), lambda i: (0, 0)),      # b2 resident
            ],
            out_specs=pl.BlockSpec((tm, d_out_p), lambda i: (i, 0)),
            compiler_params=pltpu.CompilerParams(
                dimension_semantics=("parallel",),
                vmem_limit_bytes=vmem_limit),
            cost_estimate=cost,
        )(x2d, w1, b1, w2_p, b2_p)
    else:
        grid = (n_m, d_ff // tk)
        out2d = pl.pallas_call(
            _mlp_kernel_streamed,
            out_shape=jax.ShapeDtypeStruct((m_pad, d_out_p), x.dtype),
            grid=grid,
            in_specs=[
                pl.BlockSpec((tm, d_model), lambda i, j: (i, 0)),   # x tile
                pl.BlockSpec((d_model, tk), lambda i, j: (0, j)),   # w1 col block
                pl.BlockSpec((1, tk), lambda i, j: (0, j)),         # b1 block
                pl.BlockSpec((tk, d_out_p), lambda i, j: (j, 0)),   # w2 row block
                pl.BlockSpec((1, d_out_p), lambda i, j: (0, 0)),    # b2 resident
            ],
            out_specs=pl.BlockSpec((tm, d_out_p), lambda i, j: (i, 0)),
            scratch_shapes=[pltpu.VMEM((tm, d_out_p), jnp.float32)],
            compiler_params=pltpu.CompilerParams(
                dimension_semantics=("parallel", "arbitrary"),
                vmem_limit_bytes=vmem_limit),
            cost_estimate=cost,
        )(x2d, w1, b1, w2_p, b2_p)

    return out2d[:m, :d_out].reshape(*lead, d_out)


# ---------------------------------------------------------------------------
# Params / test
# ---------------------------------------------------------------------------
def init_mlp_params(key, d_model, d_out, dtype=jnp.float32):
    """Deterministic init mimicking torch.nn.Linear (uniform +/- 1/sqrt(fan_in)).
    Weights stored transposed vs PyTorch: shape (in, out) so y = x @ W + b."""
    k1, k2, k3, k4 = jax.random.split(key, 4)
    bound = 1.0 / math.sqrt(d_model)
    w1 = jax.random.uniform(k1, (d_model, d_model), dtype, -bound, bound)
    b1 = jax.random.uniform(k2, (1, d_model), dtype, -bound, bound)
    w2 = jax.random.uniform(k3, (d_model, d_out), dtype, -bound, bound)
    b2 = jax.random.uniform(k4, (1, d_out), dtype, -bound, bound)
    return w1, b1, w2, b2


if __name__ == "__main__":
    key = jax.random.PRNGKey(0)
    k_x, k_p = jax.random.split(key)

    batch, seq, d_model, d_out = 2, 8, 32, 8
    x = jax.random.normal(k_x, (batch, seq, d_model), dtype=jnp.float32)
    w1, b1, w2, b2 = init_mlp_params(k_p, d_model, d_out)

    out = mlp_forward(x, w1, b1, w2, b2)
    out = jax.block_until_ready(out)

    # Reference in plain JAX (exact GELU), same math as the PyTorch module.
    h_ref = x @ w1 + b1
    h_ref = 0.5 * h_ref * (1.0 + jax.lax.erf(h_ref / math.sqrt(2.0)))
    ref = h_ref @ w2 + b2
    assert out.shape == (batch, seq, d_out)
    assert jnp.allclose(out, ref, atol=1e-5, rtol=1e-5)

    print("KERNEL_OK")
</pallas_src>

<mosaic_0001>
module attributes {stable_mosaic.version = 11 : i64} {
  func.func @_mlp_kernel_resident(%arg0: i32, %arg1: memref<8x32xf32, #tpu.memory_space<vmem>>, %arg2: memref<32x32xf32, #tpu.memory_space<vmem>>, %arg3: memref<1x32xf32, #tpu.memory_space<vmem>>, %arg4: memref<32x128xf32, #tpu.memory_space<vmem>>, %arg5: memref<1x128xf32, #tpu.memory_space<vmem>>, %arg6: memref<8x128xf32, #tpu.memory_space<vmem>>) attributes {dimension_semantics = [#tpu.dimension_semantics<parallel>], iteration_bounds = array<i64: 2>, scalar_prefetch = 0 : i64, scratch_operands = 0 : i64, tpu.core_type = #tpu.core_type<tc>, window_params = [{transform_indices = @transform_0, window_bounds = array<i64: 8, 32>}, {pipeline_mode = #tpu.pipeline_mode<synchronous>, transform_indices = @transform_1, window_bounds = array<i64: 32, 32>}, {pipeline_mode = #tpu.pipeline_mode<synchronous>, transform_indices = @transform_2, window_bounds = array<i64: 1, 32>}, {pipeline_mode = #tpu.pipeline_mode<synchronous>, transform_indices = @transform_3, window_bounds = array<i64: 32, 128>}, {pipeline_mode = #tpu.pipeline_mode<synchronous>, transform_indices = @transform_4, window_bounds = array<i64: 1, 128>}, {transform_indices = @transform_5, window_bounds = array<i64: 8, 128>}]} {
    %c0 = arith.constant 0 : index
    %c0_0 = arith.constant 0 : index
    %0 = vector.load %arg1[%c0, %c0_0] : memref<8x32xf32, #tpu.memory_space<vmem>>, vector<8x32xf32>
    %c0_1 = arith.constant 0 : index
    %c0_2 = arith.constant 0 : index
    %1 = vector.load %arg2[%c0_1, %c0_2] : memref<32x32xf32, #tpu.memory_space<vmem>>, vector<32x32xf32>
    %cst = arith.constant dense<0.000000e+00> : vector<8x32xf32>
    %2 = tpu.matmul %0, %1, %cst {dimension_numbers = #tpu.dot_dimension_numbers<[1], [0], [0], [1], [0, 0, 1, 1], [], []>} : vector<8x32xf32>, vector<32x32xf32>, vector<8x32xf32> -> vector<8x32xf32>
    %c0_3 = arith.constant 0 : index
    %c0_4 = arith.constant 0 : index
    %3 = vector.load %arg3[%c0_3, %c0_4] : memref<1x32xf32, #tpu.memory_space<vmem>>, vector<1x32xf32>
    %4 = vector.broadcast %3 : vector<1x32xf32> to vector<8x32xf32>
    %5 = arith.addf %2, %4 : vector<8x32xf32>
    %cst_5 = arith.constant 5.000000e-01 : f32
    %6 = vector.broadcast %cst_5 : f32 to vector<8x32xf32>
    %7 = arith.mulf %6, %5 : vector<8x32xf32>
    %cst_6 = arith.constant 0.707106769 : f32
    %8 = vector.broadcast %cst_6 : f32 to vector<8x32xf32>
    %9 = arith.mulf %5, %8 : vector<8x32xf32>
    %10 = math.erf %9 : vector<8x32xf32>
    %cst_7 = arith.constant 1.000000e+00 : f32
    %11 = vector.broadcast %cst_7 : f32 to vector<8x32xf32>
    %12 = arith.addf %11, %10 : vector<8x32xf32>
    %13 = arith.mulf %7, %12 : vector<8x32xf32>
    %c0_8 = arith.constant 0 : index
    %c0_9 = arith.constant 0 : index
    %14 = vector.load %arg4[%c0_8, %c0_9] : memref<32x128xf32, #tpu.memory_space<vmem>>, vector<32x128xf32>
    %cst_10 = arith.constant dense<0.000000e+00> : vector<8x128xf32>
    %15 = tpu.matmul %13, %14, %cst_10 {dimension_numbers = #tpu.dot_dimension_numbers<[1], [0], [0], [1], [0, 0, 1, 1], [], []>} : vector<8x32xf32>, vector<32x128xf32>, vector<8x128xf32> -> vector<8x128xf32>
    %c0_11 = arith.constant 0 : index
    %c0_12 = arith.constant 0 : index
    %16 = vector.load %arg5[%c0_11, %c0_12] : memref<1x128xf32, #tpu.memory_space<vmem>>, vector<1x128xf32>
    %17 = vector.broadcast %16 : vector<1x128xf32> to vector<8x128xf32>
    %18 = arith.addf %15, %17 : vector<8x128xf32>
    %c0_13 = arith.constant 0 : index
    %c0_14 = arith.constant 0 : index
    %19 = vector.load %arg6[%c0_13, %c0_14] : memref<8x128xf32, #tpu.memory_space<vmem>>, vector<8x128xf32>
    tpu.vector_store %arg6[%c0_13, %c0_14], %18 {strides = array<i32>} : memref<8x128xf32, #tpu.memory_space<vmem>>, vector<8x128xf32>,
    return
  }
  func.func @transform_0(%arg0: i32) -> (i32, i32) {
    %c0_i32 = arith.constant 0 : i32
    %c0_i32_0 = arith.constant 0 : i32
    return %arg0, %c0_i32 : i32, i32
  }
  func.func @transform_1(%arg0: i32) -> (i32, i32) {
    %c0_i32 = arith.constant 0 : i32
    %c0_i32_0 = arith.constant 0 : i32
    %c0_i32_1 = arith.constant 0 : i32
    return %c0_i32, %c0_i32_0 : i32, i32
  }
  func.func @transform_2(%arg0: i32) -> (i32, i32) {
    %c0_i32 = arith.constant 0 : i32
    %c0_i32_0 = arith.constant 0 : i32
    %c0_i32_1 = arith.constant 0 : i32
    return %c0_i32, %c0_i32_0 : i32, i32
  }
  func.func @transform_3(%arg0: i32) -> (i32, i32) {
    %c0_i32 = arith.constant 0 : i32
    %c0_i32_0 = arith.constant 0 : i32
    %c0_i32_1 = arith.constant 0 : i32
    return %c0_i32, %c0_i32_0 : i32, i32
  }
  func.func @transform_4(%arg0: i32) -> (i32, i32) {
    %c0_i32 = arith.constant 0 : i32
    %c0_i32_0 = arith.constant 0 : i32
    %c0_i32_1 = arith.constant 0 : i32
    return %c0_i32, %c0_i32_0 : i32, i32
  }
  func.func @transform_5(%arg0: i32) -> (i32, i32) {
    %c0_i32 = arith.constant 0 : i32
    %c0_i32_0 = arith.constant 0 : i32
    return %arg0, %c0_i32 : i32, i32
  }
}

</mosaic_0001>

<bundles_post_ra>
// kernel: mlp_forward.1
= control target key start
LH: loop header
LB: loop body
LE: loop exit
PB: predicated region body
PF: predicated region fallthrough
CT: control target
= control target key end

     0   :  { %s444_s18 = smov 0   ;;  %s500_s0 = inlined_call_operand.vmem [shape: f32[16,32], index: 0, kind: input, shape index: {}]   ;;  %s501_s1 = inlined_call_operand.vmem [shape: f32[32,32], index: 1, kind: input, shape index: {}]   ;;  %s502_s2 = inlined_call_operand.vmem [shape: f32[1,32], index: 2, kind: input, shape index: {}]   ;;  %s503_s3 = inlined_call_operand.vmem [shape: f32[32,128], index: 3, kind: input, shape index: {}]   ;;  %s504_s4 = inlined_call_operand.vmem [shape: f32[1,128], index: 4, kind: input, shape index: {}]   ;;  %s505_s5 = inlined_call_operand.vmem [shape: f32[16,128], index: 5, kind: output, shape index: {}]  }
   0x1 LB: > { %s382_s19 = sadd.s32 4294967295, %s412_s18   ;;  %p386_p0 = scmp.ge.s32.totalorder %s412_s18, 1  ;;  %s412_s18 = sphi %s444_s18, %s15_s18  }
   0x2   : > { %p186_p1 = scmp.lt.s32.totalorder %s412_s18, 3 }
   0x4   : > { %p187_p2 = pnand %p386_p0, %p186_p1 }
   0x5   : > { %p212_p3 = scmp.lt.s32.totalorder (!%p187_p2), %s382_s19, 1 }
   0x6   : > { %190 = sbr.rel (%p187_p2) target bundleno = 327 (0x147), region = 40 }
   0xb   : > { %v224_v0 = vld [vmem:[%s501_s1 + $0x18] sm:$0xff]  ;;  %v223_v1 = vld [vmem:[%s501_s1 + $0x10] sm:$0xff]  ;;  %v222_v2 = vld [vmem:[%s501_s1 + $0x8] sm:$0xff]  ;;  %s507_s19 = smov (!%p212_p3, %s382_s19), 1  ;;  %vm229_vm0 = vcmask 261120  }
   0xc   : > { %245 = vmatpush.msra.mxu0 %v224_v0  ;;  %v221_v3 = vld [vmem:[%s501_s1] sm:$0xff]  ;;  %s387_s28 = sshll.u32 %s507_s19, 3  ;;  %v300_v17 = vld [vmem:[%s503_s3 + $0x18] sm:$0xff]  ;;  %v299_v18 = vld [vmem:[%s503_s3 + $0x10] sm:$0xff] }
   0xd   : > { %s215_s6 = scalar_lea.vmem %s500_s0, %s387_s28  ;;  %v402_v5 = vld [vmem:[%s502_s2] ss:$0 sm:$0xff]  ;;  %320 = vmatpush.msra.mxu1 %v300_v17  ;;  %v298_v21 = vld [vmem:[%s503_s3 + $0x8] sm:$0xff]  ;;  %s219_s23 = scalar_lea.vmem %s505_s5, %s387_s28 }
   0xe   : > { %246 = vmatpush.msra.mxu0 %v223_v1  ;;  %v220_v4 = vld [vmem:[%s215_s6] sm:$0xff] }
   0xf   : > { %321 = vmatpush.msra.mxu1 %v299_v18  ;;  %v297_v23 = vld [vmem:[%s503_s3] sm:$0xff] }
  0x10   : > { %247 = vmatpush.msra.mxu0 %v222_v2  ;;  %v403_v51 = vld [vmem:[%s504_s4] ss:$0 sm:$0xff] }
  0x11   : > { %322 = vmatpush.msra.mxu1 %v298_v21 }
  0x12   : > { %248 = vmatpush.msra.mxu0 %v221_v3 }
  0x13   : > { %389 = vmatmul.msk.f32.vlgmr.msra.gmra.mxu0 %vm229_vm0, %v220_v4  ;;  %323 = vmatpush.msra.mxu1 %v297_v23 }
  0x90   : > { %v250_v6 = vpop.f32.mrf.mxu0 }
  0x91   : > { %v251_v7 = vadd.f32 %v402_v5, %v250_v6 }
  0x93   : > { %v254_v8 = vmul.f32 0.70710677, %v251_v7  ;;  %v253_v48 = vmul.f32 0.5, %v251_v7 }
  0x95   : > { %v255_v9 = vmul.f32 %v254_v8, %v254_v8 }
  0x97   : > { %v256_v10 = vmin.f32 %v255_v9, 16.0 }
  0x99   : > { %v257_v11 = vmul.f32 2.1237322e-06, %v256_v10  ;;  %v268_v12 = vmul.f32 3.8918573e-05, %v256_v10 }
  0x9b   : > { %v258_v13 = vadd.f32 0.00028619796, %v257_v11  ;;  %v269_v14 = vadd.f32 0.001143296, %v268_v12 }
  0x9d   : > { %v259_v15 = vmul.f32 %v258_v13, %v256_v10  ;;  %v270_v16 = vmul.f32 %v269_v14, %v256_v10 }
  0x9f   : > { %v271_v19 = vadd.f32 0.014752088, %v270_v16  ;;  %v260_v20 = vadd.f32 0.0036580483, %v259_v15 }
  0xa1   : > { %v272_v22 = vmul.f32 %v271_v19, %v256_v10  ;;  %v261_v25 = vmul.f32 %v260_v20, %v256_v10 }
  0xa3   : > { %v273_v24 = vadd.f32 0.112945676, %v272_v22  ;;  %v262_v28 = vadd.f32 0.05243302, %v261_v25 }
  0xa5   : > { %v274_v26 = vmul.f32 %v273_v24, %v256_v10  ;;  %v263_v31 = vmul.f32 %v262_v28, %v256_v10 }
  0xa7   : > { %v275_v27 = vadd.f32 0.4994258, %v274_v26  ;;  %v264_v32 = vadd.f32 0.18741608, %v263_v31 }
  0xa9   : > { %v276_v29 = vmul.f32 %v275_v27, %v256_v10  ;;  %v265_v34 = vmul.f32 %v264_v32, %v256_v10 }
  0xab   : > { %v277_v30 = vadd.f32 1.0, %v276_v29  ;;  %v266_v38 = vadd.f32 1.1283791, %v265_v34 }
  0xad   : > { %404 = vrcp.f32 %v277_v30  ;;  %v289_v37 = vand.u32 2147483648, %v277_v30  ;;  %v287_v40 = vand.u32 2147483647, %v277_v30  ;;  %vm283_vm2 = vweird.f32 %v277_v30 }
  0xae   : > { %v267_v43 = vmul.f32 %v266_v38, %v254_v8 }
  0xaf   : > { %v290_v42 = vor.u32 1.1754944e-38, %v289_v37  ;;  %vm288_vm4 = vcmp.eq.f32.partialorder %v287_v40, 8.507059e+37 }
  0xb3   : > { %v405_v33 = vpop.eup %404 }
  0xb4   : > { %v279_v35 = vmul.f32 %v405_v33, %v277_v30  ;;  %vm284_vm1 = vweird.f32 %v405_v33 }
  0xb5   : > { %vm285_vm3 = vmor %vm283_vm2, %vm284_vm1 }
  0xb6   : > { %v280_v36 = vsub.f32 1.0, %v279_v35 }
  0xb8   : > { %v281_v39 = vmul.f32 %v405_v33, %v280_v36 }
  0xba   : > { %v282_v41 = vadd.f32 %v405_v33, %v281_v39 }
  0xbc   : > { %v286_v44 = vsel %vm285_vm3, %v405_v33, %v282_v41 }
  0xbd   : > { %v291_v45 = vsel %vm288_vm4, %v290_v42, %v286_v44 }
  0xbe   : > { %v292_v46 = vmul.f32 %v291_v45, %v267_v43 }
  0xc0   : > { %v390_v47 = vclamps-f32 %v292_v46, 1.0 }
  0xc2   : > { %v295_v49 = vadd.f32 1.0, %v390_v47 }
  0xc4   : > { %v296_v50 = vmul.f32 %v295_v49, %v253_v48 }
  0xc6   : > { %391 = vmatmul.msk.f32.vlgmr.msra.gmra.mxu1 %vm229_vm0, %v296_v50 }
 0x143   : > { %v325_v52 = vpop.f32.mrf.mxu1 }
 0x144   : > { %v326_v53 = vadd.f32 %v403_v51, %v325_v52 }
 0x146   : > { %328 = vst [vmem:[%s219_s23] sm:$0xff] %v326_v53 }
 0x147 PF: > { %s15_s18 = sadd.s32 1, %s412_s18  }
 0x148   : > { %p12_p4 = scmp.ge.s32.totalorder %s15_s18, 4  }
 0x14a   :  { %14 = sbr.rel (!%p12_p4) target bundleno = 1 (0x1), region = 70 }

</bundles_post_ra>
